<compile_context>
chip_gen: v6e
topology: v6e:2x2x1
jax: 0.10.0
libtpu: 0.0.40
codegen_flags: <defaults>
</compile_context>

<pallas_src>
import functools
import math

import jax
import jax.numpy as jnp
from jax.experimental import pallas as pl
from jax.experimental.pallas import tpu as pltpu

_BN_EPS = 1e-5
_BF16 = jnp.bfloat16


def _tile_m(M, pref=1024):
    """Largest power-of-two-friendly tile along M (= N*H*W) that divides M."""
    if M <= pref:
        return M
    t = pref
    while M % t:
        t //= 2
    return max(t, 1)


def _parallel_params():
    return pltpu.CompilerParams(dimension_semantics=("parallel",))


# --------------------------------------------------------------------------
# Pallas kernels
# --------------------------------------------------------------------------
def _softmax_lastdim(x):
    m = jnp.max(x, axis=-1, keepdims=True)
    e = jnp.exp(x - m)
    return e / jnp.sum(e, axis=-1, keepdims=True)


def _mm_relu_kernel(a_ref, b_ref, o_ref):
    # conv (bias=False) + BN(eval, folded into B) + ReLU
    acc = jnp.dot(a_ref[...], b_ref[...], preferred_element_type=jnp.float32)
    o_ref[...] = jnp.maximum(acc, 0.0).astype(o_ref.dtype)


def _mm_softmax_kernel(a_ref, b_ref, bias_ref, o_ref):
    # conv + bias + channel softmax (score head inside CostAggregation)
    acc = jnp.dot(a_ref[...], b_ref[...], preferred_element_type=jnp.float32)
    o_ref[...] = _softmax_lastdim(acc + bias_ref[...])


def _mm_softmax_expect_kernel(a_ref, b_ref, bias_ref, sl_ref, o_ref, dep_ref):
    # score_conv3: conv + bias + softmax + depth expectation, fused
    acc = jnp.dot(a_ref[...], b_ref[...], preferred_element_type=jnp.float32)
    p = _softmax_lastdim(acc + bias_ref[...])
    o_ref[...] = p
    dep_ref[...] = jnp.sum(p * sl_ref[...], axis=-1, keepdims=True)


def _mm_offset_weight_kernel(a_ref, b_ref, bias_ref, off_ref, wt_ref, *, n_off):
    # offset + weight heads share the same dilated im2col slab: one matmul,
    # softmax only over the weight columns.
    acc = jnp.dot(a_ref[...], b_ref[...], preferred_element_type=jnp.float32)
    acc = acc + bias_ref[...]
    off_ref[...] = acc[:, :n_off]
    wt_ref[...] = _softmax_lastdim(acc[:, n_off:])


def _agg_expect_kernel(s_ref, w_ref, sl_ref, o_ref, dep_ref):
    # neighbor weighted sum + depth expectation
    out = jnp.sum(s_ref[...] * w_ref[...], axis=1)
    o_ref[...] = out
    dep_ref[...] = jnp.sum(out * sl_ref[...], axis=-1, keepdims=True)


# --------------------------------------------------------------------------
# im2col + Pallas wrappers (all channels-last)
# --------------------------------------------------------------------------
def _im2col_3x3_nhwc(x, dilation=1):
    """NHWC -> [N*H*W, 9*C] patches for a 3x3 conv with padding == dilation."""
    N, H, W, C = x.shape
    p = dilation
    xp = jnp.pad(x, ((0, 0), (p, p), (p, p), (0, 0)))
    cols = []
    for kh in range(3):
        for kw in range(3):
            cols.append(xp[:, kh * dilation:kh * dilation + H,
                           kw * dilation:kw * dilation + W, :])
    patches = jnp.stack(cols, axis=3)                      # [N, H, W, 9, C]
    return patches.reshape(N * H * W, 9 * C)


def conv_bn_relu(x_nhwc, b_mat, *, dilation=1):
    """3x3 conv (bias=False) + BN(eval, folded) + ReLU via fused Pallas matmul."""
    N, H, W, _ = x_nhwc.shape
    a = _im2col_3x3_nhwc(x_nhwc.astype(_BF16), dilation)
    M, K = a.shape
    O = b_mat.shape[1]
    tm = _tile_m(M)
    y = pl.pallas_call(
        _mm_relu_kernel,
        out_shape=jax.ShapeDtypeStruct((M, O), _BF16),
        grid=(M // tm,),
        in_specs=[pl.BlockSpec((tm, K), lambda i: (i, 0)),
                  pl.BlockSpec((K, O), lambda i: (0, 0))],
        out_specs=pl.BlockSpec((tm, O), lambda i: (i, 0)),
        compiler_params=_parallel_params(),
    )(a, b_mat)
    return y.reshape(N, H, W, O)


def conv_softmax(x_nhwc, b_mat, bias):
    """3x3 conv + bias + channel softmax (dilation=1), fused."""
    N, H, W, _ = x_nhwc.shape
    a = _im2col_3x3_nhwc(x_nhwc.astype(_BF16), 1)
    M, K = a.shape
    O = b_mat.shape[1]
    tm = _tile_m(M)
    y = pl.pallas_call(
        _mm_softmax_kernel,
        out_shape=jax.ShapeDtypeStruct((M, O), jnp.float32),
        grid=(M // tm,),
        in_specs=[pl.BlockSpec((tm, K), lambda i: (i, 0)),
                  pl.BlockSpec((K, O), lambda i: (0, 0)),
                  pl.BlockSpec((1, O), lambda i: (0, 0))],
        out_specs=pl.BlockSpec((tm, O), lambda i: (i, 0)),
        compiler_params=_parallel_params(),
    )(a, b_mat, bias.reshape(1, O))
    return y.reshape(N, H, W, O)


def conv_softmax_expect(x_nhwc, b_mat, bias, slices):
    """score_conv3 path: conv + bias + softmax + depth expectation, fused."""
    N, H, W, _ = x_nhwc.shape
    a = _im2col_3x3_nhwc(x_nhwc.astype(_BF16), 1)
    M, K = a.shape
    O = b_mat.shape[1]
    tm = _tile_m(M)
    score, depth = pl.pallas_call(
        _mm_softmax_expect_kernel,
        out_shape=(jax.ShapeDtypeStruct((M, O), jnp.float32),
                   jax.ShapeDtypeStruct((M, 1), jnp.float32)),
        grid=(M // tm,),
        in_specs=[pl.BlockSpec((tm, K), lambda i: (i, 0)),
                  pl.BlockSpec((K, O), lambda i: (0, 0)),
                  pl.BlockSpec((1, O), lambda i: (0, 0)),
                  pl.BlockSpec((1, O), lambda i: (0, 0))],
        out_specs=(pl.BlockSpec((tm, O), lambda i: (i, 0)),
                   pl.BlockSpec((tm, 1), lambda i: (i, 0))),
        compiler_params=_parallel_params(),
    )(a, b_mat, bias.reshape(1, O), slices.reshape(1, O))
    return score.reshape(N, H, W, O), depth.reshape(N, H, W, 1)


def conv_offset_weight(x_nhwc, b_mat, bias, *, n_off, dilation):
    """Fused offset + weight head convs (same dilation), weight softmaxed."""
    N, H, W, _ = x_nhwc.shape
    a = _im2col_3x3_nhwc(x_nhwc.astype(_BF16), dilation)
    M, K = a.shape
    O = b_mat.shape[1]
    n_wt = O - n_off
    tm = _tile_m(M)
    off, wt = pl.pallas_call(
        functools.partial(_mm_offset_weight_kernel, n_off=n_off),
        out_shape=(jax.ShapeDtypeStruct((M, n_off), jnp.float32),
                   jax.ShapeDtypeStruct((M, n_wt), jnp.float32)),
        grid=(M // tm,),
        in_specs=[pl.BlockSpec((tm, K), lambda i: (i, 0)),
                  pl.BlockSpec((K, O), lambda i: (0, 0)),
                  pl.BlockSpec((1, O), lambda i: (0, 0))],
        out_specs=(pl.BlockSpec((tm, n_off), lambda i: (i, 0)),
                   pl.BlockSpec((tm, n_wt), lambda i: (i, 0))),
        compiler_params=_parallel_params(),
    )(a, b_mat, bias.reshape(1, O))
    return off.reshape(N, H, W, n_off), wt.reshape(N, H, W, n_wt)


def aggregate_expect(sampled_mkd, weight_mk1, slices):
    """sum_k sampled[m,k,:] * w[m,k]  +  depth expectation of the result."""
    M, K, D = sampled_mkd.shape
    tm = _tile_m(M)
    score, depth = pl.pallas_call(
        _agg_expect_kernel,
        out_shape=(jax.ShapeDtypeStruct((M, D), jnp.float32),
                   jax.ShapeDtypeStruct((M, 1), jnp.float32)),
        grid=(M // tm,),
        in_specs=[pl.BlockSpec((tm, K, D), lambda i: (i, 0, 0)),
                  pl.BlockSpec((tm, K, 1), lambda i: (i, 0, 0)),
                  pl.BlockSpec((1, D), lambda i: (0, 0))],
        out_specs=(pl.BlockSpec((tm, D), lambda i: (i, 0)),
                   pl.BlockSpec((tm, 1), lambda i: (i, 0))),
        compiler_params=_parallel_params(),
    )(sampled_mkd, weight_mk1, slices.reshape(1, D))
    return score, depth


# --------------------------------------------------------------------------
# Glue in plain JAX (upsample, grid_sample): channels-last
# --------------------------------------------------------------------------
def _lin_idx(size_in, size_out):
    pos = jnp.arange(size_out, dtype=jnp.float32) * (
        (size_in - 1) / max(size_out - 1, 1))
    i0 = jnp.clip(jnp.floor(pos), 0, size_in - 1).astype(jnp.int32)
    i1 = jnp.clip(i0 + 1, 0, size_in - 1)
    w1 = pos - i0.astype(jnp.float32)
    return i0, i1, w1


def upsample2x_align_corners_nhwc(x):
    """nn.Upsample(scale_factor=2, mode='bilinear', align_corners=True), NHWC."""
    N, H, W, C = x.shape
    Ho, Wo = 2 * H, 2 * W
    y0, y1, wy = _lin_idx(H, Ho)
    x0, x1, wx = _lin_idx(W, Wo)
    r0 = jnp.take(x, y0, axis=1)
    r1 = jnp.take(x, y1, axis=1)
    rows = r0 * (1.0 - wy)[None, :, None, None] + r1 * wy[None, :, None, None]
    c0 = jnp.take(rows, x0, axis=2)
    c1 = jnp.take(rows, x1, axis=2)
    return c0 * (1.0 - wx)[None, None, :, None] + c1 * wx[None, None, :, None]


def grid_sample_bilinear_border_nhwc(score_nhwc, grid, H, W):
    """F.grid_sample(mode='bilinear', align_corners=True, padding_mode='border').
    score: [N,H,W,D] channels-last; grid: [N,Hg,Wg,2] normalized. Returns
    [N, Hg*Wg, D]."""
    N, D = score_nhwc.shape[0], score_nhwc.shape[3]
    Hg, Wg = grid.shape[1], grid.shape[2]
    xs = jnp.clip((grid[..., 0] + 1.0) * 0.5 * (W - 1), 0.0, W - 1)
    ys = jnp.clip((grid[..., 1] + 1.0) * 0.5 * (H - 1), 0.0, H - 1)
    x0f = jnp.floor(xs)
    y0f = jnp.floor(ys)
    wx1 = (xs - x0f).reshape(N, Hg * Wg, 1)
    wy1 = (ys - y0f).reshape(N, Hg * Wg, 1)
    x0 = jnp.clip(x0f, 0, W - 1).astype(jnp.int32)
    x1 = jnp.clip(x0 + 1, 0, W - 1)
    y0 = jnp.clip(y0f, 0, H - 1).astype(jnp.int32)
    y1 = jnp.clip(y0 + 1, 0, H - 1)
    flat = score_nhwc.reshape(N, H * W, D)

    def gather(yi, xi):
        idx = (yi * W + xi).reshape(N, Hg * Wg, 1)
        return jnp.take_along_axis(flat, idx, axis=1)

    v00, v01 = gather(y0, x0), gather(y0, x1)
    v10, v11 = gather(y1, x0), gather(y1, x1)
    return (v00 * (1 - wy1) * (1 - wx1) + v01 * (1 - wy1) * wx1 +
            v10 * wy1 * (1 - wx1) + v11 * wy1 * wx1)


# --------------------------------------------------------------------------
# Parameter init (deterministic, mirrors the PyTorch __init__) + weight prep
# --------------------------------------------------------------------------
def kaiming_conv(key, out_c, in_c, k=3):
    fan_out = out_c * k * k
    std = math.sqrt(2.0 / fan_out)
    return std * jax.random.normal(key, (out_c, in_c, k, k), jnp.float32)


def _conv_to_mat(w, *, bn=False):
    """[O, C, 3, 3] torch-layout weight -> [9*C, O] matmul matrix (bf16),
    with BN(eval: mean=0, var=1, gamma=1, beta=0) scale folded in if bn."""
    O, C = w.shape[0], w.shape[1]
    b = jnp.transpose(w, (2, 3, 1, 0)).reshape(9 * C, O)
    if bn:
        b = b * (1.0 / math.sqrt(1.0 + _BN_EPS))
    return b.astype(_BF16)


def make_original_grid(H, W, dilation, neighbors):
    d = float(dilation)
    y_grid, x_grid = jnp.meshgrid(jnp.arange(H, dtype=jnp.float32),
                                  jnp.arange(W, dtype=jnp.float32), indexing="ij")
    pixel = jnp.stack([x_grid, y_grid], axis=2)                # [H, W, 2]
    offs = jnp.array([[-d, -d], [0, -d], [d, -d],
                      [-d, 0], [0, 0], [d, 0],
                      [-d, d], [0, d], [d, d]], jnp.float32)   # [9, 2]
    grid = pixel[None, None] + offs[None, :, None, None, :]    # [1, 9, H, W, 2]
    return grid.reshape(1, neighbors * H, W, 2)


def init_cost_agg(key, in_channels, out_channels, H, W, dilation, neighbors,
                  depth_steps, blocks):
    p = dict(iconv_B=[], score_B=[], score_bias=[], offw_B=[], offw_bias=[])
    for _ in range(blocks):
        key, k1, k2, k3 = jax.random.split(key, 4)
        iconv_w = kaiming_conv(k1, out_channels, depth_steps + in_channels)
        score_w = kaiming_conv(k2, depth_steps, out_channels)
        offset_w = jnp.zeros((2 * neighbors, out_channels, 3, 3), jnp.float32)
        weight_w = kaiming_conv(k3, neighbors, out_channels)
        p["iconv_B"].append(_conv_to_mat(iconv_w, bn=True))
        p["score_B"].append(_conv_to_mat(score_w))
        p["score_bias"].append(jnp.zeros((depth_steps,), jnp.float32))
        p["offw_B"].append(jnp.concatenate(
            [_conv_to_mat(offset_w), _conv_to_mat(weight_w)], axis=1))
        p["offw_bias"].append(jnp.zeros((3 * neighbors,), jnp.float32))
    p["original_grid"] = make_original_grid(H, W, dilation, neighbors)
    return p


def init_decoder(key, *, depth_steps, depth_min, depth_max, height, width,
                 dilation, neighbors, blocks, channels, feat_ch, low_ch):
    ks = jax.random.split(key, 9)
    params = {
        "upconv3_B": _conv_to_mat(kaiming_conv(ks[0], feat_ch, feat_ch), bn=True),
        "iconv3_B": _conv_to_mat(kaiming_conv(ks[1], feat_ch, 2 * feat_ch), bn=True),
        "score3_B": _conv_to_mat(kaiming_conv(ks[2], depth_steps, feat_ch)),
        "score3_bias": jnp.zeros((depth_steps,), jnp.float32),
        "upconv2_B": _conv_to_mat(kaiming_conv(ks[3], depth_steps, depth_steps), bn=True),
        "upconv1_B": _conv_to_mat(kaiming_conv(ks[4], depth_steps, depth_steps), bn=True),
        "upconv0_B": _conv_to_mat(kaiming_conv(ks[5], depth_steps, depth_steps), bn=True),
    }
    dmin = depth_min / depth_max
    dstep = (1.0 - dmin) / (depth_steps - 1)
    params["depth_slices"] = jnp.array(
        [dmin + i * dstep for i in range(depth_steps)], jnp.float32)
    params["ca2"] = init_cost_agg(ks[6], low_ch[0], channels[0], height // 4,
                                  width // 4, dilation, neighbors, depth_steps, blocks[0])
    params["ca1"] = init_cost_agg(ks[7], low_ch[1], channels[1], height // 2,
                                  width // 2, dilation, neighbors, depth_steps, blocks[1])
    params["ca0"] = init_cost_agg(ks[8], 3, channels[2], height, width,
                                  dilation, neighbors, depth_steps, blocks[2])
    return params


# --------------------------------------------------------------------------
# Forward (channels-last internally)
# --------------------------------------------------------------------------
def _aggregate(score_nhwc, offset_nhwc, weight_nhwc, original_grid, slices,
               H, W, D, nb):
    N = score_nhwc.shape[0]
    # offset channel c -> (neighbor c//2, coord c%2), same as torch .view(N,nb,2,H,W)
    off = offset_nhwc.reshape(N, H, W, nb, 2)
    off = off.at[:, :, :, 4, :].set(0.0)                       # center offset forced to 0
    off = jnp.transpose(off, (0, 3, 1, 2, 4)).reshape(N, nb * H, W, 2)
    grid = original_grid + off
    gx = 2.0 * (grid[..., 0] / (W - 1)) - 1.0
    gy = 2.0 * (grid[..., 1] / (H - 1)) - 1.0
    grid_n = jnp.stack([gx, gy], axis=-1)
    sampled = grid_sample_bilinear_border_nhwc(score_nhwc, grid_n, H, W)
    sampled = sampled.reshape(N, nb, H, W, D)
    s = jnp.transpose(sampled, (0, 2, 3, 1, 4)).reshape(N * H * W, nb, D)
    w = weight_nhwc.reshape(N * H * W, nb, 1)
    score_md, depth_m1 = aggregate_expect(s, w, slices)
    return score_md.reshape(N, H, W, D), depth_m1.reshape(N, H, W, 1)


def cost_aggregation_forward(p, cfg, score_nhwc, feat_nhwc, slices):
    H, W, D = cfg["H"], cfg["W"], cfg["D"]
    nb, dil = cfg["neighbors"], cfg["dilation"]
    depth = None
    for i in range(cfg["blocks"]):
        x = jnp.concatenate([score_nhwc.astype(jnp.float32),
                             feat_nhwc.astype(jnp.float32)], axis=-1)
        iconv = conv_bn_relu(x, p["iconv_B"][i])
        sc = conv_softmax(iconv, p["score_B"][i], p["score_bias"][i])
        off, wt = conv_offset_weight(iconv, p["offw_B"][i], p["offw_bias"][i],
                                     n_off=2 * nb, dilation=dil)
        score_nhwc, depth = _aggregate(sc, off, wt, p["original_grid"], slices,
                                       H, W, D, nb)
    return score_nhwc, depth


def decoder_forward(params, cfgs, convs_nchw, img_nchw):
    slices = params["depth_slices"]

    def to_nhwc(x):
        return jnp.transpose(x, (0, 2, 3, 1))

    def to_nchw(x):
        return jnp.transpose(x, (0, 3, 1, 2))

    convs = [to_nhwc(c) for c in convs_nchw]
    img_last = to_nhwc(img_nchw[:, -1])

    def upconv(x, b_mat):
        return conv_bn_relu(upsample2x_align_corners_nhwc(x), b_mat)

    # NOTE: mirrors the reference forward exactly, which reuses upconv3/iconv3 twice.
    upconv4 = upconv(convs[4], params["upconv3_B"])
    iconv4 = conv_bn_relu(
        jnp.concatenate([upconv4.astype(jnp.float32), convs[3]], axis=-1),
        params["iconv3_B"])
    upconv3 = upconv(iconv4, params["upconv3_B"])
    iconv3 = conv_bn_relu(
        jnp.concatenate([upconv3.astype(jnp.float32), convs[2]], axis=-1),
        params["iconv3_B"])
    score3, depth3 = conv_softmax_expect(iconv3, params["score3_B"],
                                         params["score3_bias"], slices)

    upconv2 = upconv(score3, params["upconv2_B"])
    score2, depth2 = cost_aggregation_forward(params["ca2"], cfgs[2], upconv2,
                                              convs[1], slices)
    upconv1 = upconv(score2, params["upconv1_B"])
    score1, depth1 = cost_aggregation_forward(params["ca1"], cfgs[1], upconv1,
                                              convs[0], slices)
    upconv0 = upconv(score1, params["upconv0_B"])
    score0, depth0 = cost_aggregation_forward(params["ca0"], cfgs[0], upconv0,
                                              img_last, slices)

    depths = [to_nchw(depth0), to_nchw(depth1), to_nchw(depth2), to_nchw(depth3)]
    return depths, to_nchw(score0)


# --------------------------------------------------------------------------
if __name__ == "__main__":
    key = jax.random.PRNGKey(0)

    # Small, shape-consistent configuration (channel widths scaled down).
    N, H, W = 2, 32, 32
    D = 8                 # depth_steps
    Cf = 16               # encoder feature channels (stand-in for 512)
    low_ch = (8, 8)       # convs[1] / convs[0] channels (stand-ins for 256 / 128)
    channels = [16, 16, 8]
    blocks = [1, 1, 1]
    dilation, nb = 2, 9

    key, kp = jax.random.split(key)
    params = init_decoder(kp, depth_steps=D, depth_min=0.1, depth_max=3.0,
                          height=H, width=W, dilation=dilation, neighbors=nb,
                          blocks=blocks, channels=channels, feat_ch=Cf, low_ch=low_ch)

    cfgs = {
        2: dict(H=H // 4, W=W // 4, D=D, neighbors=nb, dilation=dilation, blocks=blocks[0]),
        1: dict(H=H // 2, W=W // 2, D=D, neighbors=nb, dilation=dilation, blocks=blocks[1]),
        0: dict(H=H, W=W, D=D, neighbors=nb, dilation=dilation, blocks=blocks[2]),
    }

    keys = jax.random.split(key, 6)
    convs = [
        jax.random.normal(keys[0], (N, low_ch[1], H // 2, W // 2), jnp.float32),
        jax.random.normal(keys[1], (N, low_ch[0], H // 4, W // 4), jnp.float32),
        jax.random.normal(keys[2], (N, Cf, H // 8, W // 8), jnp.float32),
        jax.random.normal(keys[3], (N, Cf, H // 16, W // 16), jnp.float32),
        jax.random.normal(keys[4], (N, Cf, H // 32, W // 32), jnp.float32),
    ]
    img = jax.random.normal(keys[5], (N, 2, 3, H, W), jnp.float32)

    depths, score0 = decoder_forward(params, cfgs, convs, img)
    jax.block_until_ready(depths)
    jax.block_until_ready(score0)

    assert score0.shape == (N, D, H, W)
    assert depths[0].shape == (N, 1, H, W)
    assert depths[1].shape == (N, 1, H // 2, W // 2)
    assert depths[2].shape == (N, 1, H // 4, W // 4)
    assert depths[3].shape == (N, 1, H // 8, W // 8)
    assert all(bool(jnp.all(jnp.isfinite(d))) for d in depths)

    print("KERNEL_OK")
</pallas_src>

<mosaic_0001>
module attributes {stable_mosaic.version = 11 : i64} {
  func.func @_mm_relu_kernel(%arg0: i32, %arg1: memref<8x144xbf16, #tpu.memory_space<vmem>>, %arg2: memref<144x16xbf16, #tpu.memory_space<vmem>>, %arg3: memref<8x16xbf16, #tpu.memory_space<vmem>>) attributes {dimension_semantics = [#tpu.dimension_semantics<parallel>], iteration_bounds = array<i64: 1>, scalar_prefetch = 0 : i64, scratch_operands = 0 : i64, tpu.core_type = #tpu.core_type<tc>, window_params = [{transform_indices = @transform_0, window_bounds = array<i64: 8, 144>}, {pipeline_mode = #tpu.pipeline_mode<synchronous>, transform_indices = @transform_1, window_bounds = array<i64: 144, 16>}, {transform_indices = @transform_2, window_bounds = array<i64: 8, 16>}]} {
    %c0 = arith.constant 0 : index
    %c0_0 = arith.constant 0 : index
    %0 = vector.load %arg1[%c0, %c0_0] : memref<8x144xbf16, #tpu.memory_space<vmem>>, vector<8x144xbf16>
    %c0_1 = arith.constant 0 : index
    %c0_2 = arith.constant 0 : index
    %1 = vector.load %arg2[%c0_1, %c0_2] : memref<144x16xbf16, #tpu.memory_space<vmem>>, vector<144x16xbf16>
    %cst = arith.constant dense<0.000000e+00> : vector<8x16xf32>
    %2 = tpu.matmul %0, %1, %cst {dimension_numbers = #tpu.dot_dimension_numbers<[1], [0], [0], [1], [0, 0, 1, 1], [], []>} : vector<8x144xbf16>, vector<144x16xbf16>, vector<8x16xf32> -> vector<8x16xf32>
    %cst_3 = arith.constant 0.000000e+00 : f32
    %3 = vector.broadcast %cst_3 : f32 to vector<8x16xf32>
    %4 = arith.maximumf %2, %3 : vector<8x16xf32>
    %5 = arith.truncf %4 : vector<8x16xf32> to vector<8x16xbf16>
    %c0_4 = arith.constant 0 : index
    %c0_5 = arith.constant 0 : index
    %6 = vector.load %arg3[%c0_4, %c0_5] : memref<8x16xbf16, #tpu.memory_space<vmem>>, vector<8x16xbf16>
    tpu.vector_store %arg3[%c0_4, %c0_5], %5 {strides = array<i32>} : memref<8x16xbf16, #tpu.memory_space<vmem>>, vector<8x16xbf16>,
    return
  }
  func.func @transform_0(%arg0: i32) -> (i32, i32) {
    %c0_i32 = arith.constant 0 : i32
    %c0_i32_0 = arith.constant 0 : i32
    return %arg0, %c0_i32 : i32, i32
  }
  func.func @transform_1(%arg0: i32) -> (i32, i32) {
    %c0_i32 = arith.constant 0 : i32
    %c0_i32_0 = arith.constant 0 : i32
    %c0_i32_1 = arith.constant 0 : i32
    return %c0_i32, %c0_i32_0 : i32, i32
  }
  func.func @transform_2(%arg0: i32) -> (i32, i32) {
    %c0_i32 = arith.constant 0 : i32
    %c0_i32_0 = arith.constant 0 : i32
    return %arg0, %c0_i32 : i32, i32
  }
}

</mosaic_0001>

<bundles_post_ra>
// kernel: tpu_custom_call.1
= control target key start
LH: loop header
LB: loop body
LE: loop exit
PB: predicated region body
PF: predicated region fallthrough
CT: control target
= control target key end

     0   :  { %v201_v1 = vmov 0   ;;  %vm92_vm0 = vcmask 130048   ;;  %s251_s0 = inlined_call_operand.vmem [shape: bf16[8,144], index: 0, kind: input, shape index: {}]   ;;  %s252_s1 = inlined_call_operand.vmem [shape: bf16[144,16], index: 1, kind: input, shape index: {}]   ;;  %s253_s2 = inlined_call_operand.hbm [shape: bf16[8,16], index: 2, kind: output, shape index: {}]  }
   0x1   :  { %v168_v0 = vld [vmem:[%s252_s1 + $0x38] sm:$0xff]   ;;  %96 = vmatprep.subr.bf16.mxu0 %v201_v1  ;;  %v169_v2 = vld [vmem:[%s252_s1 + $0x30] sm:$0xff]   ;;  %v170_v3 = vld [vmem:[%s252_s1 + $0x28] sm:$0xff]  }
   0x2   :  { %97 = vmatpush1.bf16.msra.mxu0 %v168_v0  ;;  %v13_v4 = vld [vmem:[%s251_s0] sm:$0xff] }
   0x3   :  { %98 = vmatprep.subr.bf16.mxu0 %v201_v1 }
   0x6   :  { %99 = vmatpush1.bf16.msra.mxu0 %v169_v2 }
   0x7   :  { %100 = vmatprep.subr.bf16.mxu0 %v201_v1 }
   0x8   :  { %7 = vsyncpa [#allocation3], 0  ;;  %v171_v5 = vld [vmem:[%s252_s1 + $0x20] sm:$0xff]   ;;  %v155_v6 = vcombine.high %v13_v4, %v13_v4  ;;  %v172_v7 = vld [vmem:[%s252_s1 + $0x18] sm:$0xff]   ;;  %v154_v12 = vcombine.low %v13_v4, %v13_v4  ;;  %s202_s28 = smov [#allocation2]   ;;  %vm138_vm1 = vcmask 125952  }
   0x9   :  { %v173_v8 = vld [vmem:[%s252_s1 + $0x10] sm:$0xff]   ;;  %v174_v9 = vld [vmem:[%s252_s1 + $0x8] sm:$0xff]   ;;  %v175_v10 = vld [vmem:[%s252_s1] sm:$0xff]   ;;  %s146_s29 = sshll.u32 %s202_s28, 4  ;;  %s147_s29 = int_to_ptr.vmem [resolvable:$true] %s146_s29 }
   0xa   :  { %101 = vmatpush1.bf16.msra.mxu0 %v170_v3  ;;  %165 = vmatprep.mubr.msk.bf16.mxu0 %vm92_vm0, %v155_v6  ;;  %v176_v11 = vld [vmem:[%s252_s1 + $0x40] sm:$0xff]   ;;  %s179_s30 = scalar_lea.vmem %s147_s29, 64  ;;  %p184_p1 = scmp.lt.s32.totalorder %s147_s29, %s147_s29 }
   0xb   :  { %102 = vmatprep.subr.bf16.mxu0 %v201_v1  ;;  %p180_p0 = scmp.ne.s32.totalorder %s147_s29, %s179_s30  ;;  %p185_p2 = scmp.lt.s32.totalorder %s179_s30, %s179_s30 }
   0xd   :  { %p186_p3 = por %p185_p2, %p184_p1 }
   0xe   :  { %103 = vmatpush1.bf16.msra.mxu0 %v171_v5 }
   0xf   :  { %104 = vmatprep.subr.bf16.mxu0 %v201_v1  ;;  %p187_p4 = pnand %p186_p3, %p180_p0 }
  0x12   :  { %105 = vmatpush1.bf16.msra.mxu0 %v172_v7 }
  0x13   :  { %106 = vmatprep.subr.bf16.mxu0 %v201_v1 }
  0x16   :  { %107 = vmatpush1.bf16.msra.mxu0 %v173_v8 }
  0x17   :  { %108 = vmatprep.subr.bf16.mxu0 %v201_v1 }
  0x1a   :  { %109 = vmatpush1.bf16.msra.mxu0 %v174_v9 }
  0x1b   :  { %110 = vmatprep.subr.bf16.mxu0 %v201_v1 }
  0x1e   :  { %111 = vmatpush1.bf16.msra.mxu0 %v175_v10 }
  0x1f   :  { %126 = vmatprep.subr.bf16.mxu0 %v201_v1 }
  0x22   :  { %127 = vmatpush2.bf16.msra.mxu0 %v176_v11 }
  0x25   :  { %129 = vmatmul.mubr.bf16.vlgmr.msra.gmra.mxu0 %v154_v12 }
  0xe5   :  { %v130_v13 = vpop.f32.mrf.mxu0 }
  0xe6   :  { %v136_v14 = vmax.f32 %v130_v13, 0.0 }
  0xe7   :  { %v132_v15 = vpop.f32.mrf.mxu0 }
  0xe8   :  { %v137_v16 = vpack.c.bf16 %v136_v14, %v136_v14 }
  0xe9   :  { %v133_v17 = vpop.f32.mrf.mxu0 }
  0xea   :  { %139 = vst.msk [vmem:[#allocation2] sm:$0xf] %vm138_vm1, %v137_v16 }
  0xeb   :  { %v134_v18 = vpop.f32.mrf.mxu0 }
  0xec   :  { %190 = shalt.err (!%p187_p4)
}
  0xed   :  { %149 = dma.vmem_to_hbm [thread:$0]  %s147_s29, 64, %s253_s2, [#allocation3]  }
  0xee   :  { %199 = dma.done.wait [#allocation3], 64  }
  0xef   :  { %200 = vsyncadd [#allocation3], 4294967232 }
  0xf0   :  { %153 = vsyncpa [#allocation3], 1 }

</bundles_post_ra>
